<compile_context>
chip_gen: v7x
topology: tpu7x:2x2x1
jax: 0.10.0
libtpu: 0.0.40
codegen_flags: <defaults>
</compile_context>

<pallas_src>
import math

import jax
import jax.numpy as jnp
from jax.experimental import pallas as pl
from jax.experimental.pallas import tpu as pltpu


def lr_kernel(idx_ref, table_ref, out_ref):
    # idx_ref:   [F, TB] int32   flattened (feature-offset) indices, batch on lanes
    # table_ref: [C, 1]  f32/bf16 stacked per-feature tables along sublanes
    # out_ref:   [1, TB] f32     per-example LR sums (lane-dense)
    idx = idx_ref[...]                       # (F, TB)
    tbl = table_ref[...]                     # (C, 1)
    F, TB = idx.shape
    C = tbl.shape[0]

    # hit[c, b] = (c == idx_flat[b, f]) for some feature f.
    iota_c = jax.lax.broadcasted_iota(jnp.int32, (C, TB), 0)
    hit = iota_c == idx[0:1, :]
    for f in range(1, F):                    # F is small & static
        hit = hit | (iota_c == idx[f:f + 1, :])

    # Select the table value where hit, else 0; sum over the flattened
    # table axis (sublanes) in fp32.
    zero = jnp.zeros((), dtype=tbl.dtype)
    masked = jnp.where(hit, jnp.broadcast_to(tbl, (C, TB)), zero)
    res = jnp.sum(masked.astype(jnp.float32), axis=0)      # (TB,)
    out_ref[...] = res[None, :]


def select_table_dtype():
    """bf16 select on v6e/v7x (native bf16 VPU); fp32 elsewhere (v5e has none)."""
    try:
        kind = jax.devices()[0].device_kind.lower()
    except Exception:
        return jnp.float32
    if any(tag in kind for tag in ("v6", "v7", "7x")):
        return jnp.bfloat16
    return jnp.float32


def lr_forward(idx, table, *, tile_b=128, table_dtype=jnp.float32):
    # idx:   [B, F] int32   per-example feature indices
    # table: [F, Vs] f32    stacked per-feature 1-d tables (zero padded rows)
    B, F = idx.shape
    Ft, Vs = table.shape
    assert Ft == F

    # Flatten the stacked tables into one column, padded to a sublane multiple.
    C = ((F * Vs + 7) // 8) * 8
    table_flat = jnp.zeros((C, 1), dtype=table_dtype)
    table_flat = table_flat.at[: F * Vs, 0].set(
        table.reshape(-1).astype(table_dtype))

    # Flattened (feature-offset) indices, transposed so batch maps to lanes.
    offs = (jnp.arange(F, dtype=jnp.int32) * Vs)[None, :]
    idx_flat = idx.astype(jnp.int32) + offs                 # (B, F)
    b_pad = ((B + tile_b - 1) // tile_b) * tile_b
    idx_flat = jnp.pad(idx_flat, ((0, b_pad - B), (0, 0)))  # pad rows -> idx 0 (discarded)
    idx_t = idx_flat.T                                      # (F, B_pad)
    grid_b = b_pad // tile_b

    flops = 2 * b_pad * C * (F + 1)
    bytes_accessed = (idx_t.size * 4
                      + table_flat.size * table_flat.dtype.itemsize
                      + b_pad * 4)

    out = pl.pallas_call(
        lr_kernel,
        out_shape=jax.ShapeDtypeStruct((1, b_pad), jnp.float32),
        grid_spec=pltpu.PrefetchScalarGridSpec(
            num_scalar_prefetch=0,
            grid=(grid_b,),
            in_specs=[
                pl.BlockSpec((F, tile_b), lambda i: (0, i)),   # idx tile
                pl.BlockSpec((C, 1), lambda i: (0, 0)),        # table resident
            ],
            out_specs=pl.BlockSpec((1, tile_b), lambda i: (0, i)),
        ),
        compiler_params=pltpu.CompilerParams(
            dimension_semantics=("parallel",)),
        cost_estimate=pl.CostEstimate(
            flops=flops, transcendentals=0, bytes_accessed=bytes_accessed),
    )(idx_t, table_flat)

    return out[0, :B][:, None]                              # [B, 1] float32


def xavier_normal_embedding(key, num_rows, dim=1):
    # nn.init.xavier_normal_ on an Embedding weight of shape (num_rows, dim):
    # fan_in = dim, fan_out = num_rows.
    std = math.sqrt(2.0 / (num_rows + dim))
    return std * jax.random.normal(key, (num_rows, dim), dtype=jnp.float32)


if __name__ == "__main__":
    # Small synthetic config: 4 categorical features with tiny vocabularies.
    feature_stastic = {"f0": 10, "f1": 7, "f2": 13, "f3": 5}
    features = [f for f in feature_stastic if f != "label"]
    F = len(features)
    B = 8

    key = jax.random.PRNGKey(0)
    keys = jax.random.split(key, 2 * F)

    vocab_sizes = [feature_stastic[f] + 1 for f in features]
    Vs = max(vocab_sizes)

    # Per-feature tables (numb+1, 1), xavier-normal init, stacked/zero-padded
    # into [F, Vs] (embedding dim 1 squeezed).
    rows = []
    for i, f in enumerate(features):
        w = xavier_normal_embedding(keys[i], vocab_sizes[i], 1)[:, 0]
        rows.append(jnp.pad(w, (0, Vs - vocab_sizes[i])))
    table = jnp.stack(rows, axis=0).astype(jnp.float32)     # (F, Vs)

    # Per-feature index columns, distinct key per feature.
    idx_cols = [
        jax.random.randint(keys[F + i], (B,), 0, vocab_sizes[i], dtype=jnp.int32)
        for i in range(F)
    ]
    idx = jnp.stack(idx_cols, axis=1)                        # (B, F) int32

    table_dtype = select_table_dtype()
    out = lr_forward(idx, table, table_dtype=table_dtype)
    out = jax.block_until_ready(out)

    # Pure-JAX reference (same semantics as the PyTorch forward), computed
    # from the same (possibly bf16-rounded) table the kernel used.
    table_eff = table.astype(table_dtype).astype(jnp.float32)
    ref = jnp.sum(
        jnp.take_along_axis(table_eff, idx.T, axis=1).T, axis=1, keepdims=True
    )
    assert out.shape == (B, 1)
    assert jnp.allclose(out, ref, atol=1e-5, rtol=1e-5), (out, ref)

    print("KERNEL_OK")
</pallas_src>

<mosaic_0001>
module attributes {stable_mosaic.version = 11 : i64} {
  func.func @lr_kernel(%arg0: i32, %arg1: memref<4x128xi32, #tpu.memory_space<vmem>>, %arg2: memref<56x1xf32, #tpu.memory_space<vmem>>, %arg3: memref<1x128xf32, #tpu.memory_space<vmem>>) attributes {dimension_semantics = [#tpu.dimension_semantics<parallel>], iteration_bounds = array<i64: 1>, scalar_prefetch = 0 : i64, scratch_operands = 0 : i64, tpu.core_type = #tpu.core_type<tc>, window_params = [{transform_indices = @transform_0, window_bounds = array<i64: 4, 128>}, {pipeline_mode = #tpu.pipeline_mode<synchronous>, transform_indices = @transform_1, window_bounds = array<i64: 56, 1>}, {transform_indices = @transform_2, window_bounds = array<i64: 1, 128>}]} {
    %c0 = arith.constant 0 : index
    %c0_0 = arith.constant 0 : index
    %0 = vector.load %arg1[%c0, %c0_0] : memref<4x128xi32, #tpu.memory_space<vmem>>, vector<4x128xi32>
    %c0_1 = arith.constant 0 : index
    %c0_2 = arith.constant 0 : index
    %1 = vector.load %arg2[%c0_1, %c0_2] : memref<56x1xf32, #tpu.memory_space<vmem>>, vector<56x1xf32>
    %2 = tpu.iota {dimensions = array<i32: 0>} : vector<56x128xi32>
    %3 = vector.extract_strided_slice %0 {offsets = [0, 0], sizes = [1, 128], strides = [1, 1]} : vector<4x128xi32> to vector<1x128xi32>
    %4 = vector.broadcast %3 : vector<1x128xi32> to vector<56x128xi32>
    %5 = arith.cmpi eq, %2, %4 : vector<56x128xi32>
    %6 = vector.extract_strided_slice %0 {offsets = [1, 0], sizes = [1, 128], strides = [1, 1]} : vector<4x128xi32> to vector<1x128xi32>
    %7 = vector.broadcast %6 : vector<1x128xi32> to vector<56x128xi32>
    %8 = arith.cmpi eq, %2, %7 : vector<56x128xi32>
    %9 = arith.ori %5, %8 : vector<56x128xi1>
    %10 = vector.extract_strided_slice %0 {offsets = [2, 0], sizes = [1, 128], strides = [1, 1]} : vector<4x128xi32> to vector<1x128xi32>
    %11 = vector.broadcast %10 : vector<1x128xi32> to vector<56x128xi32>
    %12 = arith.cmpi eq, %2, %11 : vector<56x128xi32>
    %13 = arith.ori %9, %12 : vector<56x128xi1>
    %14 = vector.extract_strided_slice %0 {offsets = [3, 0], sizes = [1, 128], strides = [1, 1]} : vector<4x128xi32> to vector<1x128xi32>
    %15 = vector.broadcast %14 : vector<1x128xi32> to vector<56x128xi32>
    %16 = arith.cmpi eq, %2, %15 : vector<56x128xi32>
    %17 = arith.ori %13, %16 : vector<56x128xi1>
    %18 = vector.shape_cast %1 : vector<56x1xf32> to vector<56x1xf32>
    %19 = vector.broadcast %18 : vector<56x1xf32> to vector<56x128xf32>
    %cst = arith.constant 0.000000e+00 : f32
    %20 = vector.broadcast %cst : f32 to vector<56x128xf32>
    %21 = arith.select %17, %19, %20 : vector<56x128xi1>, vector<56x128xf32>
    %cst_3 = arith.constant dense<0.000000e+00> : vector<128xf32>
    %22 = vector.multi_reduction <add>, %21, %cst_3 [0] : vector<56x128xf32> to vector<128xf32>
    %23 = vector.shape_cast %22 : vector<128xf32> to vector<1x128xf32>
    %c0_4 = arith.constant 0 : index
    %c0_5 = arith.constant 0 : index
    %24 = vector.load %arg3[%c0_4, %c0_5] : memref<1x128xf32, #tpu.memory_space<vmem>>, vector<1x128xf32>
    tpu.vector_store %arg3[%c0_4, %c0_5], %23 {strides = array<i32>} : memref<1x128xf32, #tpu.memory_space<vmem>>, vector<1x128xf32>,
    return
  }
  func.func @transform_0(%arg0: i32) -> (i32, i32) {
    %c0_i32 = arith.constant 0 : i32
    %c0_i32_0 = arith.constant 0 : i32
    return %c0_i32, %arg0 : i32, i32
  }
  func.func @transform_1(%arg0: i32) -> (i32, i32) {
    %c0_i32 = arith.constant 0 : i32
    %c0_i32_0 = arith.constant 0 : i32
    %c0_i32_1 = arith.constant 0 : i32
    return %c0_i32, %c0_i32_0 : i32, i32
  }
  func.func @transform_2(%arg0: i32) -> (i32, i32) {
    %c0_i32 = arith.constant 0 : i32
    %c0_i32_0 = arith.constant 0 : i32
    return %c0_i32, %arg0 : i32, i32
  }
}

</mosaic_0001>

<bundles_post_ra>
// kernel: tpu_custom_call.1
= control target key start
LH: loop header
LB: loop body
LE: loop exit
PB: predicated region body
PF: predicated region fallthrough
CT: control target
= control target key end

     0   :  { %v190_v2 = vmov 0   ;;  %s267_s0 = inlined_call_operand.vmem [shape: s32[4,128], index: 0, kind: input, shape index: {}]   ;;  %s268_s1 = inlined_call_operand.vmem [shape: f32[56,1], index: 1, kind: input, shape index: {}]   ;;  %s269_s2 = inlined_call_operand.hbm [shape: f32[1,128], index: 2, kind: output, shape index: {}]  }
   0x1   :  { %v15_v0 = vld [vmem:[%s268_s1 + $0x10] sm:$0xff]  ;;  %v13_v1 = vld [vmem:[%s268_s1] sm:$0xff]  ;;  %165 = vset.pattern.permute.xlu1 %v190_v2  ;;  %164 = vset.pattern.permute.xlu0 %v190_v2 }
   0x2   :  { %105 = vperm.xlu1 %165, %v15_v0   ;;  %95 = vperm.xlu0 %164, %v13_v1  }
   0x3   :  { %7 = vsyncpa [#allocation3], 0  ;;  %v16_v3 = vld [vmem:[%s268_s1 + $0x18] sm:$0xff]  ;;  %v14_v4 = vld [vmem:[%s268_s1 + $0x8] sm:$0xff]  ;;  %v20_v8 = vlaneseq  ;;  %v270_v23 = vmov 0  ;;  %v272_v25 = vmov 0 }
   0x4   :  { %v18_v5 = vld [vmem:[%s268_s1 + $0x28] sm:$0xff]  ;;  %v17_v6 = vld [vmem:[%s268_s1 + $0x20] sm:$0xff]  ;;  %v19_v7 = vld [vmem:[%s268_s1 + $0x30] sm:$0xff]  ;;  %v276_v30 = vmov 0 }
   0x5   :  { %v21_v9 = vshrl.u32 %v20_v8, 7  ;;  %v12_v12 = vld [vmem:[%s267_s0] sm:$0xf]  ;;  %s191_s0 = smov [#allocation2]  }
   0x6   :  { %110 = vperm.xlu1 %165, %v16_v3   ;;  %100 = vperm.xlu0 %164, %v14_v4   ;;  %s154_s1 = sshll.u32 %s191_s0, 4  ;;  %s155_s1 = int_to_ptr.vmem [resolvable:$true] %s154_s1 }
   0x7   :  { %v30_v10 = vsub.s32 0, %v21_v9  ;;  %v41_v11 = vsub.s32 1, %v21_v9  ;;  %v23_v13 = vadd.s32 16, %v21_v9  ;;  %v59_v14 = vsub.s32 2, %v21_v9  ;;  %s166_s25 = scalar_lea.vmem %s155_s1, 16  ;;  %s170_s26 = scalar_lea.vmem %s155_s1, 32 }
   0x8   :  { %v77_v17 = vsub.s32 3, %v21_v9  ;;  %v22_v19 = vadd.s32 8, %v21_v9  ;;  %v24_v20 = vadd.s32 24, %v21_v9  ;;  %v25_v22 = vadd.s32 32, %v21_v9  ;;  %p167_p0 = scmp.ne.s32.totalorder %s155_s1, %s166_s25  ;;  %p171_p1 = scmp.lt.s32.totalorder %s155_s1, %s155_s1 }
   0x9   :  { %v31_v15 = vrot.slane %v12_v12, %v30_v10  ;;  %v42_v16 = vrot.slane %v12_v12, %v41_v11  ;;  %v60_v18 = vrot.slane %v12_v12, %v59_v14  ;;  %v26_v24 = vadd.s32 40, %v21_v9  ;;  %p172_p2 = scmp.lt.s32.totalorder %s170_s26, %s166_s25 }
   0xa   :  { %120 = vperm.xlu1 %165, %v18_v5   ;;  %115 = vperm.xlu0 %164, %v17_v6   ;;  %v78_v21 = vrot.slane %v12_v12, %v77_v17  ;;  %v27_v26 = vadd.s32 48, %v21_v9 }
   0xb   :  { %vm34_vm0 = vcmp.eq.s32.totalorder %v23_v13, %v31_v15  ;;  %vm45_vm1 = vcmp.eq.s32.totalorder %v23_v13, %v42_v16  ;;  %vm63_vm3 = vcmp.eq.s32.totalorder %v23_v13, %v60_v18  ;;  %vm32_vm4 = vcmp.eq.s32.totalorder %v21_v9, %v31_v15  ;;  %p173_p3 = por %p172_p2, %p171_p1 }
   0xc   :  { %vm52_vm2 = vmor %vm34_vm0, %vm45_vm1  ;;  %vm43_vm5 = vcmp.eq.s32.totalorder %v21_v9, %v42_v16  ;;  %vm33_vm7 = vcmp.eq.s32.totalorder %v22_v19, %v31_v15  ;;  %vm44_vm8 = vcmp.eq.s32.totalorder %v22_v19, %v42_v16  ;;  %vm81_vm9 = vcmp.eq.s32.totalorder %v23_v13, %v78_v21 }
   0xd   :  { %vm70_vm6 = vmor %vm52_vm2, %vm63_vm3  ;;  %vm61_vm11 = vcmp.eq.s32.totalorder %v21_v9, %v60_v18  ;;  %vm35_vm12 = vcmp.eq.s32.totalorder %v24_v20, %v31_v15  ;;  %vm46_vm13 = vcmp.eq.s32.totalorder %v24_v20, %v42_v16  ;;  %vm62_vm15 = vcmp.eq.s32.totalorder %v22_v19, %v60_v18  ;;  %p174_p4 = pnand %p173_p3, %p167_p0 }
   0xe   :  { %125 = vperm.xlu0 %164, %v19_v7   ;;  %vm50_vm10 = vmor %vm32_vm4, %vm43_vm5  ;;  %vm79_vm2 = vcmp.eq.s32.totalorder %v21_v9, %v78_v21  ;;  %vm64_vm4 = vcmp.eq.s32.totalorder %v24_v20, %v60_v18 }
   0xf   :  { %vm51_vm14 = vmor %vm33_vm7, %vm44_vm8  ;;  %vm80_vm7 = vcmp.eq.s32.totalorder %v22_v19, %v78_v21 }
  0x10   :  { %vm231_vm0 = vmor %vm70_vm6, %vm81_vm9  ;;  %vm36_vm6 = vcmp.eq.s32.totalorder %v25_v22, %v31_v15  ;;  %vm47_vm9 = vcmp.eq.s32.totalorder %v25_v22, %v42_v16 }
  0x11   :  { %v271_v23 = vsel %vm231_vm0, 4294967295, %v270_v23  ;;  %vm68_vm1 = vmor %vm50_vm10, %vm61_vm11  ;;  %vm82_vm10 = vcmp.eq.s32.totalorder %v24_v20, %v78_v21 }
  0x12   :  { %vm53_vm3 = vmor %vm35_vm12, %vm46_vm13  ;;  %vm37_vm12 = vcmp.eq.s32.totalorder %v26_v24, %v31_v15  ;;  %vm48_vm13 = vcmp.eq.s32.totalorder %v26_v24, %v42_v16 }
  0x13   :  { %vm69_vm5 = vmor %vm51_vm14, %vm62_vm15  ;;  %vm65_vm15 = vcmp.eq.s32.totalorder %v25_v22, %v60_v18 }
  0x14   :  { %vm235_vm8 = vmor %vm68_vm1, %vm79_vm2  ;;  %vm38_vm2 = vcmp.eq.s32.totalorder %v27_v26, %v31_v15 }
  0x15   :  { %v273_v25 = vsel %vm235_vm8, 4294967295, %v272_v25  ;;  %vm71_vm0 = vmor %vm53_vm3, %vm64_vm4  ;;  %vm49_vm8 = vcmp.eq.s32.totalorder %v27_v26, %v42_v16  ;;  %vm66_vm4 = vcmp.eq.s32.totalorder %v26_v24, %v60_v18 }
  0x16   :  { %vm239_vm11 = vmor %vm69_vm5, %vm80_vm7  ;;  %vm278_vm5 = vnez %v273_v25 }
  0x17   :  { %vm54_vm14 = vmor %vm36_vm6, %vm47_vm9  ;;  %vm83_vm6 = vcmp.eq.s32.totalorder %v25_v22, %v78_v21 }
  0x18   :  { %vm243_vm1 = vmor %vm71_vm0, %vm82_vm10  ;;  %vm67_vm0 = vcmp.eq.s32.totalorder %v27_v26, %v60_v18  ;;  %vm279_vm10 = vnez %v271_v23 }
  0x19   :  { %v277_v30 = vsel %vm243_vm1, 4294967295, %v276_v30  ;;  %vm55_vm3 = vmor %vm37_vm12, %vm48_vm13  ;;  %vm84_vm12 = vcmp.eq.s32.totalorder %v26_v24, %v78_v21 }
  0x1a   :  { %vm72_vm7 = vmor %vm54_vm14, %vm65_vm15  ;;  %vm85_vm14 = vcmp.eq.s32.totalorder %v27_v26, %v78_v21 }
  0x1b   :  { %vm56_vm9 = vmor %vm38_vm2, %vm49_vm8 }
  0x1c   :  { %vm73_vm1 = vmor %vm55_vm3, %vm66_vm4 }
  0x1d   :  { %vm90_vm13 = vmor %vm72_vm7, %vm83_vm6 }
  0x1e   :  { %vm91_vm15 = vmor %vm73_vm1, %vm84_vm12 }
  0x81   :  { %v106_v27 = vpop.permute.xlu1 %105  ;;  %v96_v28 = vpop.permute.xlu0 %95 }
  0x82   :  { %v128_v33 = vsel %vm278_vm5, %v96_v28, 0.0  ;;  %v130_v36 = vsel %vm279_vm10, %v106_v27, 0.0  ;;  %vm280_vm5 = vnez %v277_v30 }
  0x85   :  { %v111_v31 = vpop.permute.xlu1 %110  ;;  %v101_v32 = vpop.permute.xlu0 %100 }
  0x86   :  { %v129_v34 = vsel %vm239_vm11, %v101_v32, 0.0  ;;  %v131_v39 = vsel %vm280_vm5, %v111_v31, 0.0  ;;  %vm74_vm11 = vmor %vm56_vm9, %vm67_vm0 }
  0x87   :  { %v135_v35 = vadd.f32 %v129_v34, %v128_v33  ;;  %vm92_vm8 = vmor %vm74_vm11, %vm85_vm14 }
  0x89   :  { %v136_v37 = vadd.f32 %v135_v35, %v130_v36  ;;  %v116_v38 = vpop.permute.xlu0 %115  ;;  %v121_v40 = vpop.permute.xlu1 %120 }
  0x8a   :  { %v132_v42 = vsel %vm90_vm13, %v116_v38, 0.0  ;;  %v133_v45 = vsel %vm91_vm15, %v121_v40, 0.0 }
  0x8b   :  { %v137_v41 = vadd.f32 %v136_v37, %v131_v39 }
  0x8d   :  { %v138_v43 = vadd.f32 %v137_v41, %v132_v42  ;;  %v126_v44 = vpop.permute.xlu0 %125 }
  0x8e   :  { %v134_v47 = vsel %vm92_vm8, %v126_v44, 0.0 }
  0x8f   :  { %v139_v46 = vadd.f32 %v138_v43, %v133_v45 }
  0x91   :  { %v140_v48 = vadd.f32 %v139_v46, %v134_v47 }
  0x93   :  { %v141_v49 = vrot.slane %v140_v48, 4 }
  0x95   :  { %v142_v50 = vadd.f32 %v141_v49, %v140_v48 }
  0x97   :  { %v143_v51 = vrot.slane %v142_v50, 2 }
  0x99   :  { %v144_v52 = vadd.f32 %v143_v51, %v142_v50 }
  0x9b   :  { %v145_v53 = vrot.slane %v144_v52, 1 }
  0x9d   :  { %v146_v54 = vadd.f32 %v145_v53, %v144_v52 }
  0x9f   :  { %147 = vst [vmem:[#allocation2] sm:$0x1] %v146_v54 }
  0xa0   :  { %177 = shalt.err (!%p174_p4)
}
  0xa1   :  { %s178_s29 = scalar_lea.hbm %s269_s2, 16 }
  0xa2   :  { %p179_p5 = scmp.ne.s32.totalorder %s269_s2, %s178_s29  ;;  %p182_p6 = scmp.lt.u32.totalorder %s178_s29, %s269_s2 }
  0xa4   :  { %p184_p7 = pnand %p182_p6, %p179_p5 }
  0xa6   :  { %187 = shalt.err (!%p184_p7)
}
  0xa7   :  { %157 = dma.vmem_to_hbm [thread:$0]  %s155_s1, 16, %s269_s2, [#allocation3]  }
  0xa8   :  { %188 = dma.done.wait [#allocation3], 16  }
  0xa9   :  { %189 = vsyncadd [#allocation3], 4294967280 }
  0xaa   :  { %161 = vsyncpa [#allocation3], 1 }

</bundles_post_ra>
